<compile_context>
chip_gen: v5e
topology: v5e:2x2
jax: 0.10.0
libtpu: 0.0.40
codegen_flags: <defaults>
</compile_context>

<pallas_src>
import functools
import math

import jax
import jax.numpy as jnp
from jax.experimental import pallas as pl
from jax.experimental.pallas import tpu as pltpu


# ------------------------------ tiling helper -------------------------------

def _tile(dim, cap, align):
    """Largest tile <= cap that divides dim and is `align`-aligned; full dim if small."""
    if dim <= cap:
        return dim
    t = (cap // align) * align
    while t >= align:
        if dim % t == 0:
            return t
        t -= align
    return dim


# ----------------------------- Pallas kernels ------------------------------

def _matmul_kernel(x_ref, w_ref, b_ref, o_ref, acc_ref, *, activation):
    """Tiled y = act(x @ w + b) with f32 accumulation over the K grid axis."""
    k = pl.program_id(2)

    @pl.when(k == 0)
    def _():
        acc_ref[...] = jnp.zeros_like(acc_ref)

    acc_ref[...] += jnp.dot(x_ref[...], w_ref[...],
                            preferred_element_type=jnp.float32)

    @pl.when(k == pl.num_programs(2) - 1)
    def _():
        y = acc_ref[...] + b_ref[...].astype(jnp.float32)
        if activation == "relu":
            y = jnp.maximum(y, 0.0)
        elif activation == "tanh":
            y = jnp.tanh(y)
        elif activation == "gelu":
            y = jax.nn.gelu(y, approximate=True)
        o_ref[...] = y.astype(o_ref.dtype)


def linear(x, w, b, activation="none", out_dtype=jnp.bfloat16,
           tm=256, tn=256, tk=512):
    """y = act(x @ w + b); x: [M, K] bf16, w: [K, N] bf16, b: [N] f32."""
    M, K = x.shape
    K2, N = w.shape
    assert K == K2
    tm = _tile(M, tm, 8)
    tn = _tile(N, tn, 128)
    tk = _tile(K, tk, 128)
    grid = (M // tm, N // tn, K // tk)
    return pl.pallas_call(
        functools.partial(_matmul_kernel, activation=activation),
        out_shape=jax.ShapeDtypeStruct((M, N), out_dtype),
        grid=grid,
        in_specs=[
            pl.BlockSpec((tm, tk), lambda i, j, k: (i, k)),
            pl.BlockSpec((tk, tn), lambda i, j, k: (k, j)),
            pl.BlockSpec((1, tn), lambda i, j, k: (0, j)),
        ],
        out_specs=pl.BlockSpec((tm, tn), lambda i, j, k: (i, j)),
        scratch_shapes=[pltpu.VMEM((tm, tn), jnp.float32)],
        compiler_params=pltpu.CompilerParams(
            dimension_semantics=("parallel", "parallel", "arbitrary")),
    )(x, w, b.reshape(1, N))


def _matmul_res_ln_kernel(x_ref, w_ref, b_ref, res_ref, g_ref, beta_ref,
                          o_ref, acc_ref, *, eps):
    """Fused y = LayerNorm(residual + x @ w + b); K-reduction on grid axis 1."""
    k = pl.program_id(1)

    @pl.when(k == 0)
    def _():
        acc_ref[...] = jnp.zeros_like(acc_ref)

    acc_ref[...] += jnp.dot(x_ref[...], w_ref[...],
                            preferred_element_type=jnp.float32)

    @pl.when(k == pl.num_programs(1) - 1)
    def _():
        y = (acc_ref[...] + b_ref[...].astype(jnp.float32)
             + res_ref[...].astype(jnp.float32))
        mean = jnp.mean(y, axis=-1, keepdims=True)
        yc = y - mean
        var = jnp.mean(yc * yc, axis=-1, keepdims=True)
        inv = jax.lax.rsqrt(var + eps)
        o_ref[...] = (yc * inv * g_ref[...].astype(jnp.float32)
                      + beta_ref[...].astype(jnp.float32)).astype(o_ref.dtype)


def linear_residual_layernorm(x, w, b, residual, gamma, beta, *, eps=1e-12,
                              tm=256, tk=512):
    """LayerNorm(residual + x @ w + b); normalizes over the full N dim per tile."""
    M, K = x.shape
    K2, N = w.shape
    assert K == K2 and residual.shape == (M, N)
    tm = _tile(M, tm, 8)
    tk = _tile(K, tk, 128)
    grid = (M // tm, K // tk)
    return pl.pallas_call(
        functools.partial(_matmul_res_ln_kernel, eps=eps),
        out_shape=jax.ShapeDtypeStruct((M, N), jnp.bfloat16),
        grid=grid,
        in_specs=[
            pl.BlockSpec((tm, tk), lambda i, k: (i, k)),
            pl.BlockSpec((tk, N), lambda i, k: (k, 0)),
            pl.BlockSpec((1, N), lambda i, k: (0, 0)),
            pl.BlockSpec((tm, N), lambda i, k: (i, 0)),
            pl.BlockSpec((1, N), lambda i, k: (0, 0)),
            pl.BlockSpec((1, N), lambda i, k: (0, 0)),
        ],
        out_specs=pl.BlockSpec((tm, N), lambda i, k: (i, 0)),
        scratch_shapes=[pltpu.VMEM((tm, N), jnp.float32)],
        compiler_params=pltpu.CompilerParams(
            dimension_semantics=("parallel", "arbitrary")),
    )(x, w, b.reshape(1, N), residual, gamma.reshape(1, N), beta.reshape(1, N))


def _layernorm_kernel(x_ref, g_ref, b_ref, o_ref, *, eps):
    x = x_ref[...].astype(jnp.float32)
    mean = jnp.mean(x, axis=-1, keepdims=True)
    xc = x - mean
    var = jnp.mean(xc * xc, axis=-1, keepdims=True)
    inv = jax.lax.rsqrt(var + eps)
    o_ref[...] = (xc * inv * g_ref[...] + b_ref[...]).astype(o_ref.dtype)


def layernorm(x, gamma, beta, *, eps=1e-12, out_dtype=jnp.bfloat16, tm=256):
    """Standalone LayerNorm (used for the embedding LayerNorm)."""
    M, H = x.shape
    tm = _tile(M, tm, 8)
    grid = (M // tm,)
    return pl.pallas_call(
        functools.partial(_layernorm_kernel, eps=eps),
        out_shape=jax.ShapeDtypeStruct((M, H), out_dtype),
        grid=grid,
        in_specs=[
            pl.BlockSpec((tm, H), lambda i: (i, 0)),
            pl.BlockSpec((1, H), lambda i: (0, 0)),
            pl.BlockSpec((1, H), lambda i: (0, 0)),
        ],
        out_specs=pl.BlockSpec((tm, H), lambda i: (i, 0)),
        compiler_params=pltpu.CompilerParams(dimension_semantics=("parallel",)),
    )(x, gamma.reshape(1, H), beta.reshape(1, H))


def _attention_kernel(qkv_ref, bias_ref, o_ref, *, heads, dh, scale):
    """One batch element per grid step; all heads processed from packed QKV.

    qkv_ref block: (1, S, 3H) bf16 ; bias_ref block: (1, 1, S) f32 additive mask.
    Output block: (1, S, H) bf16 (heads written back into their column slots).
    """
    H = heads * dh
    bias = bias_ref[0]  # (1, S), broadcasts over score rows
    for h in range(heads):
        q = qkv_ref[0, :, h * dh:(h + 1) * dh]                # (S, dh)
        k = qkv_ref[0, :, H + h * dh:H + (h + 1) * dh]        # (S, dh)
        v = qkv_ref[0, :, 2 * H + h * dh:2 * H + (h + 1) * dh]
        # q · kᵀ without materializing a transpose: contract over head_dim.
        s = jax.lax.dot_general(q, k, (((1,), (1,)), ((), ())),
                                preferred_element_type=jnp.float32)
        s = s * scale + bias
        m = jnp.max(s, axis=-1, keepdims=True)
        p = jnp.exp(s - m)
        denom = jnp.sum(p, axis=-1, keepdims=True)
        p = (p * pl.reciprocal(denom, approx=True)).astype(v.dtype)
        ctx = jnp.dot(p, v, preferred_element_type=jnp.float32)   # (S, dh)
        o_ref[0, :, h * dh:(h + 1) * dh] = ctx.astype(o_ref.dtype)


def attention(qkv, mask_bias, *, heads, dh, scale):
    """qkv: [B, S, 3H] bf16 packed (Q|K|V); mask_bias: [B, 1, S] f32 additive."""
    B, S, threeH = qkv.shape
    H = heads * dh
    assert threeH == 3 * H
    return pl.pallas_call(
        functools.partial(_attention_kernel, heads=heads, dh=dh, scale=scale),
        out_shape=jax.ShapeDtypeStruct((B, S, H), jnp.bfloat16),
        grid=(B,),
        in_specs=[
            pl.BlockSpec((1, S, threeH), lambda b: (b, 0, 0)),
            pl.BlockSpec((1, 1, S), lambda b: (b, 0, 0)),
        ],
        out_specs=pl.BlockSpec((1, S, H), lambda b: (b, 0, 0)),
        compiler_params=pltpu.CompilerParams(dimension_semantics=("parallel",)),
    )(qkv, mask_bias)


# ------------------------- parameter initialization -------------------------

def init_params(key, *, vocab, max_pos, type_vocab, hidden, heads, inter,
                layers, middle):
    def dense(k, fan_in, fan_out):
        return 0.02 * jax.random.normal(k, (fan_in, fan_out), jnp.float32)

    keys = iter(jax.random.split(key, 8 + 8 * layers))
    p = {
        "word_emb": 0.02 * jax.random.normal(next(keys), (vocab, hidden), jnp.float32),
        "pos_emb": 0.02 * jax.random.normal(next(keys), (max_pos, hidden), jnp.float32),
        "type_emb": 0.02 * jax.random.normal(next(keys), (type_vocab, hidden), jnp.float32),
        "emb_ln_g": jnp.ones((hidden,), jnp.float32),
        "emb_ln_b": jnp.zeros((hidden,), jnp.float32),
        "pool_w": dense(next(keys), hidden, hidden),
        "pool_b": jnp.zeros((hidden,), jnp.float32),
        "trans_w": dense(next(keys), hidden, middle),
        "trans_b": jnp.zeros((middle,), jnp.float32),
        "layers": [],
    }
    for _ in range(layers):
        lp = {
            # Fused Q|K|V projection: [H, 3H]
            "wqkv": dense(next(keys), hidden, 3 * hidden),
            "bqkv": jnp.zeros((3 * hidden,), jnp.float32),
            "wo": dense(next(keys), hidden, hidden), "bo": jnp.zeros((hidden,), jnp.float32),
            "ln1_g": jnp.ones((hidden,), jnp.float32), "ln1_b": jnp.zeros((hidden,), jnp.float32),
            "w1": dense(next(keys), hidden, inter), "b1": jnp.zeros((inter,), jnp.float32),
            "w2": dense(next(keys), inter, hidden), "b2": jnp.zeros((hidden,), jnp.float32),
            "ln2_g": jnp.ones((hidden,), jnp.float32), "ln2_b": jnp.zeros((hidden,), jnp.float32),
        }
        p["layers"].append(lp)
    return p


# ------------------------------ model forward -------------------------------

def text_model_forward(params, bert_inputs, masks, token_type_ids=None, *, heads):
    """Mirrors TextModel.forward: returns (trans(last_hidden_state), trans(pooler_output))."""
    B, S = bert_inputs.shape
    H = params["word_emb"].shape[1]
    assert H % heads == 0
    dh = H // heads
    M = B * S

    if token_type_ids is None:
        token_type_ids = jnp.zeros_like(bert_inputs)

    bf16 = lambda a: a.astype(jnp.bfloat16)

    # Embeddings (gather is glue) + LayerNorm (Pallas). Activations flow as bf16.
    emb = (params["word_emb"][bert_inputs]
           + params["pos_emb"][:S][None, :, :]
           + params["type_emb"][token_type_ids])
    x = layernorm(emb.reshape(M, H), params["emb_ln_g"], params["emb_ln_b"])  # [M, H] bf16

    # Additive attention-mask bias, one [1, S] row per batch (no head broadcast in HBM).
    mask_bias = ((1.0 - masks.astype(jnp.float32)) * -1e9).reshape(B, 1, S)
    scale = 1.0 / math.sqrt(dh)

    for lp in params["layers"]:
        # Fused QKV projection -> packed [M, 3H] bf16.
        qkv = linear(x, bf16(lp["wqkv"]), lp["bqkv"])
        # Per-batch attention over packed QKV (no k-transpose / head transposes in HBM).
        ctx = attention(qkv.reshape(B, S, 3 * H), mask_bias,
                        heads=heads, dh=dh, scale=scale)
        # Output projection fused with residual-add + LayerNorm.
        x = linear_residual_layernorm(ctx.reshape(M, H), bf16(lp["wo"]), lp["bo"],
                                      residual=x, gamma=lp["ln1_g"], beta=lp["ln1_b"])
        # FFN: w1 + GELU, then w2 fused with residual-add + LayerNorm.
        ffn = linear(x, bf16(lp["w1"]), lp["b1"], activation="gelu")
        x = linear_residual_layernorm(ffn, bf16(lp["w2"]), lp["b2"],
                                      residual=x, gamma=lp["ln2_g"], beta=lp["ln2_b"])

    last_hidden_state = x.reshape(B, S, H)
    cls = last_hidden_state[:, 0, :]                                     # [B, H] bf16
    pooler_out = linear(cls, bf16(params["pool_w"]), params["pool_b"],
                        activation="tanh")                               # [B, H] bf16

    # trans = Dropout(identity, eval) -> Linear -> ReLU, applied to both outputs.
    trans_w = bf16(params["trans_w"])
    trans_hidden = linear(x, trans_w, params["trans_b"], activation="relu",
                          out_dtype=jnp.float32).reshape(B, S, -1)
    trans_pool = linear(pooler_out, trans_w, params["trans_b"], activation="relu",
                        out_dtype=jnp.float32)
    return trans_hidden, trans_pool


# ----------------------------------- main ------------------------------------

if __name__ == "__main__":
    # Small, module-consistent config
    B, S = 2, 8
    VOCAB, MAX_POS, TYPE_VOCAB = 50, 16, 2
    HIDDEN, HEADS, INTER, LAYERS = 32, 2, 64, 2
    MIDDLE = 16  # config.middle_hidden_size

    key = jax.random.PRNGKey(0)
    k_param, k_ids = jax.random.split(key)

    params = init_params(k_param, vocab=VOCAB, max_pos=MAX_POS,
                         type_vocab=TYPE_VOCAB, hidden=HIDDEN, heads=HEADS,
                         inter=INTER, layers=LAYERS, middle=MIDDLE)

    bert_inputs = jax.random.randint(k_ids, (B, S), 0, VOCAB, dtype=jnp.int32)
    masks = jnp.ones((B, S), jnp.int32).at[1, 6:].set(0)   # second sample padded

    trans_hidden, trans_pool = text_model_forward(
        params, bert_inputs, masks, token_type_ids=None, heads=HEADS)

    jax.block_until_ready((trans_hidden, trans_pool))
    assert trans_hidden.shape == (B, S, MIDDLE)
    assert trans_pool.shape == (B, MIDDLE)
    print("KERNEL_OK")
</pallas_src>

<mosaic_0001>
module attributes {stable_mosaic.version = 11 : i64} {
  func.func @_layernorm_kernel(%arg0: i32, %arg1: memref<16x32xf32, #tpu.memory_space<vmem>>, %arg2: memref<1x32xf32, #tpu.memory_space<vmem>>, %arg3: memref<1x32xf32, #tpu.memory_space<vmem>>, %arg4: memref<16x32xbf16, #tpu.memory_space<vmem>>) attributes {dimension_semantics = [#tpu.dimension_semantics<parallel>], iteration_bounds = array<i64: 1>, scalar_prefetch = 0 : i64, scratch_operands = 0 : i64, tpu.core_type = #tpu.core_type<tc>, window_params = [{transform_indices = @transform_0, window_bounds = array<i64: 16, 32>}, {pipeline_mode = #tpu.pipeline_mode<synchronous>, transform_indices = @transform_1, window_bounds = array<i64: 1, 32>}, {pipeline_mode = #tpu.pipeline_mode<synchronous>, transform_indices = @transform_2, window_bounds = array<i64: 1, 32>}, {transform_indices = @transform_3, window_bounds = array<i64: 16, 32>}]} {
    %c0 = arith.constant 0 : index
    %c0_0 = arith.constant 0 : index
    %0 = vector.load %arg1[%c0, %c0_0] : memref<16x32xf32, #tpu.memory_space<vmem>>, vector<16x32xf32>
    %cst = arith.constant dense<0.000000e+00> : vector<16xf32>
    %1 = vector.multi_reduction <add>, %0, %cst [1] : vector<16x32xf32> to vector<16xf32>
    %2 = vector.shape_cast %1 : vector<16xf32> to vector<16x1xf32>
    %cst_1 = arith.constant 3.200000e+01 : f32
    %3 = vector.broadcast %cst_1 : f32 to vector<16x1xf32>
    %4 = arith.divf %2, %3 : vector<16x1xf32>
    %5 = vector.broadcast %4 : vector<16x1xf32> to vector<16x32xf32>
    %6 = arith.subf %0, %5 : vector<16x32xf32>
    %7 = arith.mulf %6, %6 : vector<16x32xf32>
    %cst_2 = arith.constant dense<0.000000e+00> : vector<16xf32>
    %8 = vector.multi_reduction <add>, %7, %cst_2 [1] : vector<16x32xf32> to vector<16xf32>
    %9 = vector.shape_cast %8 : vector<16xf32> to vector<16x1xf32>
    %cst_3 = arith.constant 3.200000e+01 : f32
    %10 = vector.broadcast %cst_3 : f32 to vector<16x1xf32>
    %11 = arith.divf %9, %10 : vector<16x1xf32>
    %cst_4 = arith.constant 9.99999996E-13 : f32
    %12 = vector.broadcast %cst_4 : f32 to vector<16x1xf32>
    %13 = arith.addf %11, %12 : vector<16x1xf32>
    %14 = math.rsqrt %13 : vector<16x1xf32>
    %15 = vector.broadcast %14 : vector<16x1xf32> to vector<16x32xf32>
    %16 = arith.mulf %6, %15 : vector<16x32xf32>
    %c0_5 = arith.constant 0 : index
    %c0_6 = arith.constant 0 : index
    %17 = vector.load %arg2[%c0_5, %c0_6] : memref<1x32xf32, #tpu.memory_space<vmem>>, vector<1x32xf32>
    %18 = vector.broadcast %17 : vector<1x32xf32> to vector<16x32xf32>
    %19 = arith.mulf %16, %18 : vector<16x32xf32>
    %c0_7 = arith.constant 0 : index
    %c0_8 = arith.constant 0 : index
    %20 = vector.load %arg3[%c0_7, %c0_8] : memref<1x32xf32, #tpu.memory_space<vmem>>, vector<1x32xf32>
    %21 = vector.broadcast %20 : vector<1x32xf32> to vector<16x32xf32>
    %22 = arith.addf %19, %21 : vector<16x32xf32>
    %23 = arith.truncf %22 : vector<16x32xf32> to vector<16x32xbf16>
    %c0_9 = arith.constant 0 : index
    %c0_10 = arith.constant 0 : index
    %24 = vector.load %arg4[%c0_9, %c0_10] : memref<16x32xbf16, #tpu.memory_space<vmem>>, vector<16x32xbf16>
    tpu.vector_store %arg4[%c0_9, %c0_10], %23 {strides = array<i32>} : memref<16x32xbf16, #tpu.memory_space<vmem>>, vector<16x32xbf16>,
    return
  }
  func.func @transform_0(%arg0: i32) -> (i32, i32) {
    %c0_i32 = arith.constant 0 : i32
    %c0_i32_0 = arith.constant 0 : i32
    return %arg0, %c0_i32 : i32, i32
  }
  func.func @transform_1(%arg0: i32) -> (i32, i32) {
    %c0_i32 = arith.constant 0 : i32
    %c0_i32_0 = arith.constant 0 : i32
    %c0_i32_1 = arith.constant 0 : i32
    return %c0_i32, %c0_i32_0 : i32, i32
  }
  func.func @transform_2(%arg0: i32) -> (i32, i32) {
    %c0_i32 = arith.constant 0 : i32
    %c0_i32_0 = arith.constant 0 : i32
    %c0_i32_1 = arith.constant 0 : i32
    return %c0_i32, %c0_i32_0 : i32, i32
  }
  func.func @transform_3(%arg0: i32) -> (i32, i32) {
    %c0_i32 = arith.constant 0 : i32
    %c0_i32_0 = arith.constant 0 : i32
    return %arg0, %c0_i32 : i32, i32
  }
}

</mosaic_0001>

<bundles_post_ra>
// kernel: tpu_custom_call.1
= control target key start
LH: loop header
LB: loop body
LE: loop exit
PB: predicated region body
PF: predicated region fallthrough
CT: control target
= control target key end

     0   :  { %8 = vsyncpa [#allocation3], 0  ;;  %s274_s0 = inlined_call_operand.hbm [shape: f32[16,32], index: 0, kind: input, shape index: {}]   ;;  %s275_s1 = inlined_call_operand.hbm [shape: f32[1,32], index: 1, kind: input, shape index: {}]   ;;  %s276_s2 = inlined_call_operand.vmem [shape: f32[1,32], index: 2, kind: input, shape index: {}]   ;;  %s277_s3 = inlined_call_operand.hbm [shape: bf16[16,32], index: 3, kind: output, shape index: {}]  }
   0x1   :  { %9 = vsyncpa [#allocation6], 0 }
   0x2   :  { %10 = vsyncpa [#allocation4], 0  ;;  %s15_s14 = sshll.u32 %s274_s0, 4  ;;  %s230_s15 = smov [#allocation2]   ;;  %s16_s14 = int_to_ptr.hbm [resolvable:$true] %s15_s14 }
   0x3   :  { %s17_s16 = sshll.u32 %s230_s15, 4  ;;  %s29_s19 = sshll.u32 %s275_s1, 4  ;;  %s18_s16 = int_to_ptr.vmem [resolvable:$true] %s17_s16  ;;  %s30_s19 = int_to_ptr.hbm [resolvable:$true] %s29_s19 }
   0x4   :  { %s231_s20 = smov 128   ;;  %s232_s21 = smov 8  }
   0x5   :  { %23 = dma.hbm_to_vmem [thread:$0]  %s16_s14, 256, %s18_s16, [#allocation3], %s231_s20, %s231_s20, %s232_s21  }
   0x6   :  { %s233_s22 = smov [#allocation5]  }
   0x7   :  { %s31_s23 = sshll.u32 %s233_s22, 4  ;;  %s32_s23 = int_to_ptr.vmem [resolvable:$true] %s31_s23 }
   0x8   :  { %34 = dma.hbm_to_vmem [thread:$0]  %s30_s19, 16, %s32_s23, [#allocation6]  }
   0x9   :  { %224 = dma.done.wait [#allocation3], 256  }
   0xa   :  { %225 = vsyncadd [#allocation3], 4294967040 }
   0xb   :  { %226 = dma.done.wait [#allocation6], 16  }
   0xc   :  { %227 = vsyncadd [#allocation6], 4294967280  ;;  %vm47_vm0 = vcmask 261120   ;;  %v45_v0 = vld [vmem:[#allocation2] sm:$0xff]  ;;  %v46_v2 = vld [vmem:[#allocation2 + $0x8] sm:$0xff]  ;;  %v234_v4 = vmov 32.0  }
   0xd   :  { %v48_v1 = vsel %vm47_vm0, %v45_v0, 0.0  ;;  %v51_v3 = vsel %vm47_vm0, %v46_v2, 0.0  ;;  %146 = vrcp.f32 %v234_v4  ;;  %v144_v35 = vld [vmem:[#allocation5] ss:$0 sm:$0xff]  ;;  %v145_v38 = vld [vmem:[%s276_s2] ss:$0 sm:$0xff] }
   0xe   :  { %49 = vadd.xlane.f32.xlu0 %v48_v1  ;;  %vm113_vm7 = vcmask 257024   ;;  %s235_s24 = smov [#allocation7]   ;;  %s122_s2 = sshll.u32 %s277_s3, 4  ;;  %s123_s2 = int_to_ptr.hbm [resolvable:$true] %s122_s2 }
   0xf   :  { %s120_s25 = sshll.u32 %s235_s24, 4  ;;  %s236_s28 = smov 64   ;;  %s121_s25 = int_to_ptr.vmem [resolvable:$true] %s120_s25 }
  0x10   :  { %s237_s29 = smov 4  }
  0x13   :  { %v147_v5 = vpop.eup %146 }
  0x14   :  { %v55_v6 = vmul.f32 32.0, %v147_v5  ;;  %vm59_vm1 = vweird.f32 %v147_v5 }
  0x16   :  { %52 = vadd.xlane.f32.xlu0 %v51_v3  ;;  %v56_v7 = vsub.f32 1.0, %v55_v6 }
  0x18   :  { %v57_v8 = vmul.f32 %v147_v5, %v56_v7 }
  0x1a   :  { %v58_v9 = vadd.f32 %v147_v5, %v57_v8 }
  0x1c   :  { %v60_v10 = vsel %vm59_vm1, %v147_v5, %v58_v9 }
  0x81   :  { %v50_v11 = vpop.xlane.xlu0 %49 }
  0x82   :  { %v61_v12 = vmul.f32 %v60_v10, %v50_v11 }
  0x84   :  { %v63_v13 = vsub.f32 %v45_v0, %v61_v12 }
  0x86   :  { %v65_v14 = vmul.f32 %v63_v13, %v63_v13 }
  0x88   :  { %v67_v15 = vsel %vm47_vm0, %v65_v14, 0.0 }
  0x89   :  { %68 = vadd.xlane.f32.xlu1 %v67_v15  ;;  %v53_v16 = vpop.xlane.xlu0 %52 }
  0x8a   :  { %v62_v17 = vmul.f32 %v60_v10, %v53_v16 }
  0x8c   :  { %v64_v18 = vsub.f32 %v46_v2, %v62_v17 }
  0x8e   :  { %v66_v19 = vmul.f32 %v64_v18, %v64_v18 }
  0x90   :  { %v70_v20 = vsel %vm47_vm0, %v66_v19, 0.0 }
  0x91   :  { %71 = vadd.xlane.f32.xlu1 %v70_v20 }
  0xfc   :  { %v69_v21 = vpop.xlane.xlu1 %68 }
  0xfd   :  { %v73_v22 = vmul.f32 %v69_v21, %v60_v10 }
  0xff   :  { %v75_v23 = vadd.f32 1e-12, %v73_v22 }
 0x101   :  { %148 = vrsqrt.f32 %v75_v23  ;;  %vm83_vm3 = vweird.f32 %v75_v23 }
 0x104   :  { %v72_v24 = vpop.xlane.xlu1 %71 }
 0x105   :  { %v74_v25 = vmul.f32 %v72_v24, %v60_v10 }
 0x107   :  { %v149_v26 = vpop.eup %148  ;;  %v76_v27 = vadd.f32 1e-12, %v74_v25 }
 0x108   :  { %v78_v28 = vmul.f32 %v149_v26, %v75_v23  ;;  %vm84_vm2 = vweird.f32 %v149_v26 }
 0x109   :  { %150 = vrsqrt.f32 %v76_v27  ;;  %vm85_vm4 = vmor %vm83_vm3, %vm84_vm2  ;;  %vm93_vm6 = vweird.f32 %v76_v27 }
 0x10a   :  { %v79_v29 = vmul.f32 %v149_v26, %v78_v28 }
 0x10c   :  { %v80_v30 = vmul.f32 0.5, %v79_v29 }
 0x10e   :  { %v81_v31 = vsub.f32 1.5, %v80_v30 }
 0x10f   :  { %v151_v32 = vpop.eup %150 }
 0x110   :  { %v82_v33 = vmul.f32 %v149_v26, %v81_v31  ;;  %v88_v34 = vmul.f32 %v151_v32, %v76_v27  ;;  %vm94_vm5 = vweird.f32 %v151_v32 }
 0x111   :  { %vm95_vm8 = vmor %vm93_vm6, %vm94_vm5 }
 0x112   :  { %v86_v36 = vsel %vm85_vm4, %v149_v26, %v82_v33  ;;  %v89_v37 = vmul.f32 %v151_v32, %v88_v34 }
 0x113   :  { %v97_v39 = vmul.f32 %v86_v36, %v63_v13 }
 0x114   :  { %v90_v40 = vmul.f32 0.5, %v89_v37 }
 0x115   :  { %v103_v41 = vmul.f32 %v144_v35, %v97_v39 }
 0x116   :  { %v91_v42 = vsub.f32 1.5, %v90_v40 }
 0x117   :  { %v109_v43 = vadd.f32 %v145_v38, %v103_v41 }
 0x118   :  { %v92_v44 = vmul.f32 %v151_v32, %v91_v42 }
 0x119   :  { %v111_v45 = vpack.c.bf16 %v109_v43, %v109_v43 }
 0x11a   :  { %v96_v46 = vsel %vm95_vm8, %v151_v32, %v92_v44 }
 0x11b   :  { %v98_v47 = vmul.f32 %v96_v46, %v64_v18  ;;  %114 = vst.msk [vmem:[#allocation7] sm:$0xf] %vm113_vm7, %v111_v45 }
 0x11d   :  { %v104_v48 = vmul.f32 %v144_v35, %v98_v47 }
 0x11f   :  { %v110_v49 = vadd.f32 %v145_v38, %v104_v48 }
 0x121   :  { %v112_v50 = vpack.c.bf16 %v110_v49, %v110_v49 }
 0x123   :  { %115 = vst.msk [vmem:[#allocation7 + $0x4] sm:$0xf] %vm113_vm7, %v112_v50 }
 0x124   :  { %128 = dma.vmem_to_hbm [thread:$0]  %s121_s25, 128, %s123_s2, [#allocation4], %s236_s28, %s236_s28, %s237_s29  }
 0x125   :  { %228 = dma.done.wait [#allocation4], 128  }
 0x126   :  { %229 = vsyncadd [#allocation4], 4294967168 }
 0x127   :  { %133 = vsyncpa [#allocation3], 1 }
 0x128   :  { %134 = vsyncpa [#allocation6], 1 }
 0x129   :  { %135 = vsyncpa [#allocation4], 1 }

</bundles_post_ra>
